<compile_context>
chip_gen: v7x
topology: tpu7x:2x2x1
jax: 0.10.0
libtpu: 0.0.40
codegen_flags: <defaults>
</compile_context>

<pallas_src>
import numpy as np
import jax
import jax.numpy as jnp
from jax import lax
from jax.experimental import pallas as pl
from jax.experimental.pallas import tpu as pltpu


def _round_up(x, m):
    return (x + m - 1) // m * m


def _mix_matmul_kernel(idx0_ref, idx1_ref, s_ref, z_ref, out_ref):
    """One output row-tile: out = W_tile @ z, W_tile built on the fly.

    idx0_ref / idx1_ref : VMEM int32 (TR, 1)  source-row index per output row (-1 = none)
    s_ref               : VMEM f32   (TR, 1)  mixing coefficient per output row
    z_ref               : VMEM f32   (N, D)   full feature matrix (resident every step)
    out_ref             : VMEM f32   (TR, D)  one output row-tile (full-tile store)
    """
    tr = out_ref.shape[0]
    n = z_ref.shape[0]
    # W[r, c] = s[r] if c == idx0[r];  1 - s[r] if c == idx1[r];  0 otherwise.
    col = lax.broadcasted_iota(jnp.int32, (tr, n), 1)
    s = s_ref[...]
    w = (jnp.where(col == idx0_ref[...], s, 0.0)
         + jnp.where(col == idx1_ref[...], 1.0 - s, 0.0))
    out_ref[...] = jnp.dot(
        w, z_ref[...], preferred_element_type=jnp.float32
    ).astype(out_ref.dtype)


def convex_concat(z, idx0, idx1, s):
    """Fused  concat([z, s*z[idx0] + (1-s)*z[idx1]])  via a single Pallas matmul kernel."""
    N, D = z.shape
    idx0 = np.asarray(idx0, np.int32)
    idx1 = np.asarray(idx1, np.int32)
    s = np.asarray(s, np.float32)
    M = int(idx0.shape[0])
    assert idx1.shape[0] == M and s.shape[0] == M
    # TPU does no runtime bounds checking on row indices: validate host-side.
    assert M == 0 or (idx0.min() >= 0 and idx0.max() < N), "idx0 out of range"
    assert M == 0 or (idx1.min() >= 0 and idx1.max() < N), "idx1 out of range"

    R = N + M                                  # real output rows (original + convex)
    TR = min(256, _round_up(R, 8))             # large row tiles amortize grid-step overhead
    R_pad = _round_up(R, TR)                   # ragged tail handled by zero pad rows
    pad = R_pad - R

    # Per-output-row "program": identity rows copy z, mixing rows build the convex
    # samples, pad rows are all-zero (index -1 never matches the iota columns).
    idx0_full = np.concatenate(
        [np.arange(N, dtype=np.int32), idx0, np.full((pad,), -1, np.int32)])[:, None]
    idx1_full = np.concatenate(
        [np.full((N,), -1, np.int32), idx1, np.full((pad,), -1, np.int32)])[:, None]
    s_full = np.concatenate(
        [np.ones((N,), np.float32), s, np.zeros((pad,), np.float32)])[:, None]

    grid = (R_pad // TR,)
    # VMEM budget: double-buffered inputs/outputs + the in-register W tile + slack.
    # Clamp to the 32 MiB default scoped limit so it is safe on v5e/v6e/v7x alike.
    need = 2 * (N * D * 4 + TR * D * 4 + 3 * TR * 4) + TR * N * 4 + (1 << 20)
    vmem_limit = int(min(max(need, 2 << 20), 32 << 20))

    out = pl.pallas_call(
        _mix_matmul_kernel,
        out_shape=jax.ShapeDtypeStruct((R_pad, D), z.dtype),
        grid_spec=pltpu.PrefetchScalarGridSpec(
            num_scalar_prefetch=0,
            grid=grid,
            in_specs=[
                pl.BlockSpec((TR, 1), lambda i: (i, 0)),   # idx0 column (VMEM)
                pl.BlockSpec((TR, 1), lambda i: (i, 0)),   # idx1 column (VMEM)
                pl.BlockSpec((TR, 1), lambda i: (i, 0)),   # s column    (VMEM)
                pl.BlockSpec((N, D), lambda i: (0, 0)),    # z: whole matrix resident
            ],
            out_specs=pl.BlockSpec((TR, D), lambda i: (i, 0)),
        ),
        compiler_params=pltpu.CompilerParams(
            dimension_semantics=("parallel",),             # independent output row-tiles
            vmem_limit_bytes=vmem_limit,
        ),
    )(jnp.asarray(idx0_full), jnp.asarray(idx1_full), jnp.asarray(s_full), z)
    return out[:R] if pad else out


class Args:
    """Deterministic stand-in for the argparse namespace used by the module."""
    multiple_convex = 1
    multiple_convex_eval = 1
    unseen_label_id = 5
    device = None
    train_batch_size = 8
    feat_dim = 128


class ConvexSampler:
    def __init__(self, args):
        self.multiple_convex = args.multiple_convex
        self.multiple_convex_eval = args.multiple_convex_eval
        self.unseen_label_id = args.unseen_label_id
        self.batch_size = args.train_batch_size
        self.oos_num = args.train_batch_size
        self.feat_dim = args.feat_dim

    def _sample_pairs(self, label_ids_np, pool_size, count, rng):
        # TODO(synk): data-dependent rejection sampling (while-loop over RNG draws) has
        # no clean Pallas equivalent; kept host-side exactly like the PyTorch module.
        idx0, idx1, svals = [], [], []
        while len(idx0) < count:
            cdt = rng.choice(pool_size, 2, replace=False)
            if label_ids_np[cdt[0]] != label_ids_np[cdt[1]]:
                s = rng.uniform(0.0, 1.0, 1)
                idx0.append(int(cdt[0]))
                idx1.append(int(cdt[1]))
                svals.append(float(s[0]))
        return (np.asarray(idx0, np.int32),
                np.asarray(idx1, np.int32),
                np.asarray(svals, np.float32))

    def forward(self, z, label_ids, mode=None, rng=None):
        rng = rng if rng is not None else np.random.default_rng(0)
        label_ids_np = np.asarray(label_ids)
        n = label_ids_np.shape[0]
        num_convex = self.batch_size * self.multiple_convex
        num_convex_eval = self.batch_size * self.multiple_convex_eval

        if mode == 'train' and n > 2:
            i0, i1, s = self._sample_pairs(label_ids_np, n - self.oos_num,
                                           num_convex, rng)
            z = convex_concat(z, i0, i1, s)      # fused copy-of-z + convex samples
            label_ids = jnp.concatenate(
                (label_ids,
                 jnp.full((num_convex,), self.unseen_label_id, label_ids.dtype)),
                axis=0)
        elif mode == 'eval' and n > 2:
            i0, i1, s = self._sample_pairs(label_ids_np, n, num_convex_eval, rng)
            z = convex_concat(z, i0, i1, s)
            label_ids = jnp.concatenate(
                (label_ids,
                 jnp.full((num_convex_eval,), self.unseen_label_id, label_ids.dtype)),
                axis=0)
        return z, label_ids


if __name__ == "__main__":
    args = Args()
    sampler = ConvexSampler(args)

    # Deterministic inputs: 16 samples of feat_dim=128.
    # First 8 rows = in-domain batch (labels 0..4), last 8 = OOS rows (unseen id).
    key = jax.random.PRNGKey(0)
    n_total = args.train_batch_size + args.train_batch_size  # batch + oos rows
    z = jax.random.normal(key, (n_total, args.feat_dim), dtype=jnp.float32)
    labels_np = np.concatenate(
        [np.arange(args.train_batch_size) % 5,
         np.full((args.train_batch_size,), args.unseen_label_id)]).astype(np.int32)
    label_ids = jnp.asarray(labels_np)

    rng = np.random.default_rng(0)
    z_out, labels_out = sampler.forward(z, label_ids, mode='train', rng=rng)
    z_out = jax.block_until_ready(z_out)
    labels_out = jax.block_until_ready(labels_out)

    # Reference check of the fused kernel against plain numpy (same rng stream).
    rng_ref = np.random.default_rng(0)
    i0, i1, s = sampler._sample_pairs(labels_np, n_total - args.train_batch_size,
                                      args.train_batch_size * args.multiple_convex,
                                      rng_ref)
    z_np = np.asarray(z)
    ref_convex = s[:, None] * z_np[i0] + (1.0 - s)[:, None] * z_np[i1]
    got = np.asarray(z_out)

    expected_rows = n_total + args.train_batch_size * args.multiple_convex
    assert z_out.shape == (expected_rows, args.feat_dim)
    assert labels_out.shape == (expected_rows,)
    # Original rows must come through the fused (identity-block) kernel unchanged.
    np.testing.assert_allclose(got[:n_total], z_np, rtol=1e-6, atol=1e-6)
    # Appended convex samples match the reference blend.
    np.testing.assert_allclose(got[n_total:], ref_convex, rtol=1e-5, atol=1e-5)
    assert np.all(np.asarray(labels_out)[n_total:] == args.unseen_label_id)

    print("KERNEL_OK")
</pallas_src>

<mosaic_0001>
module attributes {stable_mosaic.version = 11 : i64} {
  func.func @_mix_matmul_kernel(%arg0: i32, %arg1: memref<24x1xi32, #tpu.memory_space<vmem>>, %arg2: memref<24x1xi32, #tpu.memory_space<vmem>>, %arg3: memref<24x1xf32, #tpu.memory_space<vmem>>, %arg4: memref<16x128xf32, #tpu.memory_space<vmem>>, %arg5: memref<24x128xf32, #tpu.memory_space<vmem>>) attributes {dimension_semantics = [#tpu.dimension_semantics<parallel>], iteration_bounds = array<i64: 1>, scalar_prefetch = 0 : i64, scratch_operands = 0 : i64, tpu.core_type = #tpu.core_type<tc>, window_params = [{transform_indices = @transform_0, window_bounds = array<i64: 24, 1>}, {transform_indices = @transform_1, window_bounds = array<i64: 24, 1>}, {transform_indices = @transform_2, window_bounds = array<i64: 24, 1>}, {pipeline_mode = #tpu.pipeline_mode<synchronous>, transform_indices = @transform_3, window_bounds = array<i64: 16, 128>}, {transform_indices = @transform_4, window_bounds = array<i64: 24, 128>}]} {
    %0 = tpu.iota {dimensions = array<i32: 1>} : vector<24x16xi32>
    %c0 = arith.constant 0 : index
    %c0_0 = arith.constant 0 : index
    %1 = vector.load %arg3[%c0, %c0_0] : memref<24x1xf32, #tpu.memory_space<vmem>>, vector<24x1xf32>
    %c0_1 = arith.constant 0 : index
    %c0_2 = arith.constant 0 : index
    %2 = vector.load %arg1[%c0_1, %c0_2] : memref<24x1xi32, #tpu.memory_space<vmem>>, vector<24x1xi32>
    %3 = vector.broadcast %2 : vector<24x1xi32> to vector<24x16xi32>
    %4 = arith.cmpi eq, %0, %3 : vector<24x16xi32>
    %cst = arith.constant 0.000000e+00 : f32
    %5 = vector.shape_cast %1 : vector<24x1xf32> to vector<24x1xf32>
    %6 = vector.broadcast %5 : vector<24x1xf32> to vector<24x16xf32>
    %7 = vector.broadcast %cst : f32 to vector<24x16xf32>
    %8 = arith.select %4, %6, %7 : vector<24x16xi1>, vector<24x16xf32>
    %c0_3 = arith.constant 0 : index
    %c0_4 = arith.constant 0 : index
    %9 = vector.load %arg2[%c0_3, %c0_4] : memref<24x1xi32, #tpu.memory_space<vmem>>, vector<24x1xi32>
    %10 = vector.broadcast %9 : vector<24x1xi32> to vector<24x16xi32>
    %11 = arith.cmpi eq, %0, %10 : vector<24x16xi32>
    %cst_5 = arith.constant 1.000000e+00 : f32
    %12 = vector.broadcast %cst_5 : f32 to vector<24x1xf32>
    %13 = arith.subf %12, %1 : vector<24x1xf32>
    %cst_6 = arith.constant 0.000000e+00 : f32
    %14 = vector.shape_cast %13 : vector<24x1xf32> to vector<24x1xf32>
    %15 = vector.broadcast %14 : vector<24x1xf32> to vector<24x16xf32>
    %16 = vector.broadcast %cst_6 : f32 to vector<24x16xf32>
    %17 = arith.select %11, %15, %16 : vector<24x16xi1>, vector<24x16xf32>
    %18 = arith.addf %8, %17 : vector<24x16xf32>
    %c0_7 = arith.constant 0 : index
    %c0_8 = arith.constant 0 : index
    %19 = vector.load %arg4[%c0_7, %c0_8] : memref<16x128xf32, #tpu.memory_space<vmem>>, vector<16x128xf32>
    %cst_9 = arith.constant dense<0.000000e+00> : vector<24x128xf32>
    %20 = tpu.matmul %18, %19, %cst_9 {dimension_numbers = #tpu.dot_dimension_numbers<[1], [0], [0], [1], [0, 0, 1, 1], [], []>} : vector<24x16xf32>, vector<16x128xf32>, vector<24x128xf32> -> vector<24x128xf32>
    %c0_10 = arith.constant 0 : index
    %c0_11 = arith.constant 0 : index
    %21 = vector.load %arg5[%c0_10, %c0_11] : memref<24x128xf32, #tpu.memory_space<vmem>>, vector<24x128xf32>
    tpu.vector_store %arg5[%c0_10, %c0_11], %20 {strides = array<i32>} : memref<24x128xf32, #tpu.memory_space<vmem>>, vector<24x128xf32>,
    return
  }
  func.func @transform_0(%arg0: i32) -> (i32, i32) {
    %c0_i32 = arith.constant 0 : i32
    %c0_i32_0 = arith.constant 0 : i32
    return %arg0, %c0_i32 : i32, i32
  }
  func.func @transform_1(%arg0: i32) -> (i32, i32) {
    %c0_i32 = arith.constant 0 : i32
    %c0_i32_0 = arith.constant 0 : i32
    return %arg0, %c0_i32 : i32, i32
  }
  func.func @transform_2(%arg0: i32) -> (i32, i32) {
    %c0_i32 = arith.constant 0 : i32
    %c0_i32_0 = arith.constant 0 : i32
    return %arg0, %c0_i32 : i32, i32
  }
  func.func @transform_3(%arg0: i32) -> (i32, i32) {
    %c0_i32 = arith.constant 0 : i32
    %c0_i32_0 = arith.constant 0 : i32
    %c0_i32_1 = arith.constant 0 : i32
    return %c0_i32, %c0_i32_0 : i32, i32
  }
  func.func @transform_4(%arg0: i32) -> (i32, i32) {
    %c0_i32 = arith.constant 0 : i32
    %c0_i32_0 = arith.constant 0 : i32
    return %arg0, %c0_i32 : i32, i32
  }
}

</mosaic_0001>

<bundles_post_ra>
// kernel: tpu_custom_call.1
= control target key start
LH: loop header
LB: loop body
LE: loop exit
PB: predicated region body
PF: predicated region fallthrough
CT: control target
= control target key end

     0   :  { %v265_v2 = vmov 0   ;;  %s348_s0 = inlined_call_operand.vmem [shape: s32[24,1], index: 0, kind: input, shape index: {}]   ;;  %s349_s1 = inlined_call_operand.vmem [shape: s32[24,1], index: 1, kind: input, shape index: {}]   ;;  %s350_s2 = inlined_call_operand.vmem [shape: f32[24,1], index: 2, kind: input, shape index: {}]   ;;  %s351_s3 = inlined_call_operand.vmem [shape: f32[16,128], index: 3, kind: input, shape index: {}]   ;;  %s352_s4 = inlined_call_operand.hbm [shape: f32[24,128], index: 4, kind: output, shape index: {}]  }
   0x1   :  { %v24_v0 = vld [vmem:[%s348_s0 + $0x8] sm:$0xff]  ;;  %240 = vset.pattern.permute.xlu1 %v265_v2  ;;  %239 = vset.pattern.permute.xlu0 %v265_v2 }
   0x2   :  { %v21_v1 = vld [vmem:[%s350_s2 + $0x8] sm:$0xff]  ;;  %30 = vperm.xlu0 %239, %v24_v0  }
   0x3   :  { %45 = vperm.xlu1 %240, %v21_v1   ;;  %v72_v3 = vsub.f32 1.0, %v21_v1  ;;  %v57_v4 = vld [vmem:[%s349_s1 + $0x8] sm:$0xff] }
   0x4   :  { %9 = vsyncpa [#allocation3], 0  ;;  %v95_v5 = vld [vmem:[%s351_s3] sm:$0xff]  ;;  %v96_v6 = vld [vmem:[%s351_s3 + $0x8] sm:$0xff]  ;;  %v266_v10 = vmov 0.0|0.0   ;;  %vm267_vm0 = vmmov 0   ;;  %v18_v18 = vlaneseq }
   0x5   :  { %v228_v7 = vpack.c.bf16 %v96_v6, %v95_v5  ;;  %v23_v8 = vld [vmem:[%s348_s0] sm:$0xff]  ;;  %v25_v9 = vld [vmem:[%s348_s0 + $0x10] sm:$0xff]  ;;  %230 = vmatprep.subr.bf16.mxu1 %v266_v10  ;;  %227 = vmatprep.subr.bf16.mxu0 %v266_v10  ;;  %v268_v11 = vmov 0.0   ;;  %vm97_vm3 = vcmask 130048  }
   0x6   :  { %63 = vperm.xlu0 %239, %v57_v4   ;;  %221 = vmatprep.mubr.msk.f32.mxu1 %vm267_vm0, %v268_v11  ;;  %v56_v12 = vld [vmem:[%s349_s1] sm:$0xff]  ;;  %v58_v13 = vld [vmem:[%s349_s1 + $0x10] sm:$0xff]  ;;  %v19_v19 = vand.u32 127, %v18_v18  ;;  %s269_s1 = smov [#allocation2]  }
   0x7   :  { %81 = vperm.xlu1 %240, %v72_v3   ;;  %231 = vmatpush3.bf16.msra.mxu1 %v228_v7  ;;  %v22_v14 = vld [vmem:[%s350_s2 + $0x10] sm:$0xff]  ;;  %v20_v15 = vld [vmem:[%s350_s2] sm:$0xff]  ;;  %s195_s2 = sshll.u32 %s269_s1, 4  ;;  %s196_s2 = int_to_ptr.vmem [resolvable:$true] %s195_s2 }
   0x8   :  { %229 = vmatpush3.bf16.msra.mxu0 %v228_v7  ;;  %218 = vmatprep.mubr.msk.f32.mxu0 %vm267_vm0, %v268_v11  ;;  %v73_v16 = vsub.f32 1.0, %v22_v14  ;;  %v71_v17 = vsub.f32 1.0, %v20_v15  ;;  %s241_s9 = scalar_lea.vmem %s196_s2, 384  ;;  %p246_p1 = scmp.lt.s32.totalorder %s196_s2, %s196_s2 }
   0x9   :  { %p242_p0 = scmp.ne.s32.totalorder %s196_s2, %s241_s9  ;;  %p247_p2 = scmp.lt.s32.totalorder %s241_s9, %s241_s9 }
   0xa   :  { %27 = vperm.xlu0 %239, %v23_v8  }
   0xb   :  { %33 = vperm.xlu1 %240, %v25_v9   ;;  %p248_p3 = por %p247_p2, %p246_p1 }
   0xd   :  { %p249_p4 = pnand %p248_p3, %p242_p0 }
   0xe   :  { %60 = vperm.xlu0 %239, %v56_v12  }
   0xf   :  { %66 = vperm.xlu1 %240, %v58_v13  }
  0x12   :  { %40 = vperm.xlu0 %239, %v20_v15  }
  0x13   :  { %50 = vperm.xlu1 %240, %v22_v14  }
  0x16   :  { %76 = vperm.xlu0 %239, %v71_v17  }
  0x17   :  { %86 = vperm.xlu1 %240, %v73_v16  }
  0x81   :  { %v31_v20 = vpop.permute.xlu0 %30 }
  0x82   :  { %v46_v21 = vpop.permute.xlu1 %45  ;;  %vm36_vm1 = vcmp.eq.s32.totalorder %v19_v19, %v31_v20 }
  0x83   :  { %v54_v24 = vsel %vm36_vm1, %v46_v21, 0.0 }
  0x85   :  { %v64_v22 = vpop.permute.xlu0 %63 }
  0x86   :  { %v82_v23 = vpop.permute.xlu1 %81  ;;  %vm69_vm2 = vcmp.eq.s32.totalorder %v19_v19, %v64_v22 }
  0x87   :  { %v90_v25 = vsel %vm69_vm2, %v82_v23, 0.0 }
  0x88   :  { %v93_v26 = vadd.f32 %v90_v25, %v54_v24 }
  0x89   :  { %v28_v27 = vpop.permute.xlu0 %27 }
  0x8a   :  { %v34_v28 = vpop.permute.xlu1 %33  ;;  %222 = vmatmul.mubr.msk.f32.vlgmr.msra.gmra.mrb[0].mxu1 %vm97_vm3, %v93_v26  ;;  %vm35_vm4 = vcmp.eq.s32.totalorder %v19_v19, %v28_v27 }
  0x8b   :  { %224 = vmatprep.mubr.msk.f32.mxu1 %vm267_vm0, %v268_v11  ;;  %vm37_vm5 = vcmp.eq.s32.totalorder %v19_v19, %v34_v28 }
  0x8d   :  { %v61_v29 = vpop.permute.xlu0 %60 }
  0x8e   :  { %v67_v30 = vpop.permute.xlu1 %66  ;;  %vm68_vm6 = vcmp.eq.s32.totalorder %v19_v19, %v61_v29 }
  0x8f   :  { %vm70_vm7 = vcmp.eq.s32.totalorder %v19_v19, %v67_v30 }
  0x91   :  { %v41_v32 = vpop.permute.xlu0 %40 }
  0x92   :  { %v51_v31 = vpop.permute.xlu1 %50  ;;  %v53_v36 = vsel %vm35_vm4, %v41_v32, 0.0 }
  0x93   :  { %v55_v35 = vsel %vm37_vm5, %v51_v31, 0.0 }
  0x95   :  { %v77_v34 = vpop.permute.xlu0 %76 }
  0x96   :  { %v87_v33 = vpop.permute.xlu1 %86  ;;  %v89_v38 = vsel %vm68_vm6, %v77_v34, 0.0 }
  0x97   :  { %v91_v37 = vsel %vm70_vm7, %v87_v33, 0.0  ;;  %v92_v40 = vadd.f32 %v89_v38, %v53_v36 }
  0x98   :  { %v94_v39 = vadd.f32 %v91_v37, %v55_v35 }
  0x99   :  { %219 = vmatmul.mubr.msk.f32.vlgmr.msra.gmra.mrb[0].mxu0 %vm97_vm3, %v92_v40 }
  0x9a   :  { %225 = vmatmul.mubr.msk.f32.gmra.mrb[2].mxu1 %vm97_vm3, %v94_v39 }
 0x15d   :  { %v178_v41 = vpop.f32.mrb[0].mxu1 }
 0x15e   :  { %188 = vst [vmem:[#allocation2 + $0x8] sm:$0xff] %v178_v41  ;;  %v223_v42 = vpop.f32.mrb[1].mxu1 }
 0x16c   :  { %v173_v43 = vpop.f32.mrb[0].mxu0 }
 0x16d   :  { %v183_v44 = vpop.f32.mrb[2].mxu1  ;;  %187 = vst [vmem:[#allocation2] sm:$0xff] %v173_v43  ;;  %v220_v45 = vpop.f32.mrb[1].mxu0 }
 0x16e   :  { %189 = vst [vmem:[#allocation2 + $0x10] sm:$0xff] %v183_v44  ;;  %v226_v46 = vpop.f32.mrb[3].mxu1 }
 0x16f   :  { %252 = shalt.err (!%p249_p4)
}
 0x170   :  { %s253_s12 = scalar_lea.hbm %s352_s4, 384 }
 0x171   :  { %p254_p5 = scmp.ne.s32.totalorder %s352_s4, %s253_s12  ;;  %p257_p6 = scmp.lt.u32.totalorder %s253_s12, %s352_s4 }
 0x173   :  { %p259_p7 = pnand %p257_p6, %p254_p5 }
 0x175   :  { %262 = shalt.err (!%p259_p7)
}
 0x176   :  { %s270_s17 = smov 128   ;;  %s271_s18 = smov 8  }
 0x177   :  { %201 = dma.vmem_to_hbm [thread:$0]  %s196_s2, 384, %s352_s4, [#allocation3], %s270_s17, %s270_s17, %s271_s18  }
 0x178   :  { %263 = dma.done.wait [#allocation3], 384  }
 0x179   :  { %264 = vsyncadd [#allocation3], 4294966912 }
 0x17a   :  { %205 = vsyncpa [#allocation3], 1 }

</bundles_post_ra>
